<compile_context>
chip_gen: v6e
topology: v6e:2x2x1
jax: 0.10.0
libtpu: 0.0.40
codegen_flags: <defaults>
</compile_context>

<pallas_src>
import jax
import jax.numpy as jnp
from jax.experimental import pallas as pl
from jax.experimental.pallas import tpu as pltpu

LANE = 128
SUBLANE = 8


def _ceil_to(n, m):
    return ((n + m - 1) // m) * m


def _pad2d(a, rows, cols):
    return jnp.pad(a, ((0, rows - a.shape[0]), (0, cols - a.shape[1])))


# ---------------------------------------------------------------------------
# Fused Pallas kernel: per grid step (one view) run all GIN layers + pooling.
# ---------------------------------------------------------------------------
def _make_fused_kernel(num_layers):
    def kernel(a_ref, p_ref, x_ref, *rest):
        param_refs = rest[: 4 * num_layers]
        z_ref, g_ref = rest[4 * num_layers:]

        a_hat = a_ref[...]            # (Np, Np) bf16, A + (1+eps)*I already folded in
        h = x_ref[0]                  # (Np, Dp) bf16, current view
        z = None

        for l in range(num_layers):
            w1, b1, w2, b2 = param_refs[4 * l: 4 * l + 4]
            # GIN aggregation as a single MXU pass: (A + I) @ h
            agg = jnp.dot(a_hat, h, preferred_element_type=jnp.float32)
            t = jnp.dot(agg.astype(jnp.bfloat16), w1[...],
                        preferred_element_type=jnp.float32) + b1[...]
            t = jnp.maximum(t, 0.0)
            t = jnp.dot(t.astype(jnp.bfloat16), w2[...],
                        preferred_element_type=jnp.float32) + b2[...]
            z = jnp.maximum(t, 0.0)   # f32
            h = z.astype(jnp.bfloat16)

        z_ref[0] = z
        # Fused global-add-pool epilogue: g = P @ z (no extra launch / HBM trip)
        g_ref[0] = jnp.dot(p_ref[...], h, preferred_element_type=jnp.float32)

    return kernel


# ---------------------------------------------------------------------------
# Plain-JAX glue: parameters, augmentors, and the fused forward.
# ---------------------------------------------------------------------------
def init_params(key, in_dim, hidden_dim, num_layers=2):
    params = []
    d = in_dim
    for _ in range(num_layers):
        key, k1, k2 = jax.random.split(key, 3)
        w1 = jax.random.normal(k1, (d, hidden_dim), jnp.float32) * 0.1
        b1 = jnp.zeros((1, hidden_dim), jnp.float32)
        w2 = jax.random.normal(k2, (hidden_dim, hidden_dim), jnp.float32) * 0.1
        b2 = jnp.zeros((1, hidden_dim), jnp.float32)
        params.append((w1, b1, w2, b2))
        d = hidden_dim
    return params


def aug_identity(x, edge_index):
    return x, edge_index, None


def make_feature_mask_aug(key, num_features, keep_prob=0.7):
    mask = (jax.random.uniform(key, (1, num_features)) < keep_prob).astype(jnp.float32)

    def aug(x, edge_index):
        # Deterministic feature masking; graph topology unchanged.
        return x * mask, edge_index, None

    return aug
# TODO(synk): stochastic edge-dropping augmentors would need per-call RNG and a
# per-view adjacency; both augmentors here are topology-preserving by design.


def encoder_forward(x, edge_index, batch, params, augmentor, num_graphs):
    """Mirror of Encoder.forward: returns (z, g, z1, z2, g1, g2)."""
    aug1, aug2 = augmentor
    x1, _, _ = aug1(x, edge_index)
    x2, _, _ = aug2(x, edge_index)

    n, in_dim = x.shape
    hidden = params[0][2].shape[1]
    num_layers = len(params)

    np_ = _ceil_to(max(n, SUBLANE), SUBLANE)        # sublane-aligned node dim
    dp = _ceil_to(max(in_dim, LANE), LANE)          # lane-dense input dim
    hp = _ceil_to(max(hidden, LANE), LANE)          # lane-dense hidden dim

    # Shared A_hat = A + (1+eps)*I (eps=0); built once, bf16 (0/1/small ints exact).
    # .add matches PyG sum-aggregation (duplicate edges counted).
    src, dst = edge_index[0], edge_index[1]
    a_hat = jnp.zeros((np_, np_), jnp.float32)
    a_hat = a_hat.at[dst, src].add(1.0)
    a_hat = (a_hat + jnp.eye(np_, dtype=jnp.float32)).astype(jnp.bfloat16)

    # Shared pooling matrix P: (G, Np) one-hot assignment (padded cols are zero).
    pmat = jax.nn.one_hot(batch, num_graphs, dtype=jnp.float32).T
    pmat = _pad2d(pmat, num_graphs, np_).astype(jnp.bfloat16)

    # Views stacked along a leading axis, padded + cast to bf16.
    x_views = jnp.stack([x, x1, x2], axis=0)                         # (3, n, in_dim)
    x_views = jnp.pad(x_views, ((0, 0), (0, np_ - n), (0, dp - in_dim)))
    x_views = x_views.astype(jnp.bfloat16)

    # Pad weights/biases to lane-dense shapes (zero padding is exact: padded
    # hidden units stay 0 through ReLU and contribute nothing downstream).
    flat_params = []
    for li, (w1, b1, w2, b2) in enumerate(params):
        rows = dp if li == 0 else hp
        flat_params += [
            _pad2d(w1, rows, hp).astype(jnp.bfloat16),
            _pad2d(b1, 1, hp).astype(jnp.float32),
            _pad2d(w2, hp, hp).astype(jnp.bfloat16),
            _pad2d(b2, 1, hp).astype(jnp.float32),
        ]

    in_specs = [
        pl.BlockSpec((np_, np_), lambda v: (0, 0)),            # A_hat (shared)
        pl.BlockSpec((num_graphs, np_), lambda v: (0, 0)),     # P (shared)
        pl.BlockSpec((1, np_, dp), lambda v: (v, 0, 0)),       # x of current view
    ]
    for li in range(num_layers):
        rows = dp if li == 0 else hp
        in_specs += [
            pl.BlockSpec((rows, hp), lambda v: (0, 0)),        # W1
            pl.BlockSpec((1, hp), lambda v: (0, 0)),           # b1
            pl.BlockSpec((hp, hp), lambda v: (0, 0)),          # W2
            pl.BlockSpec((1, hp), lambda v: (0, 0)),           # b2
        ]

    out_specs = [
        pl.BlockSpec((1, np_, hp), lambda v: (v, 0, 0)),       # z per view
        pl.BlockSpec((1, num_graphs, hp), lambda v: (v, 0, 0)),  # g per view
    ]
    out_shape = (
        jax.ShapeDtypeStruct((3, np_, hp), jnp.float32),
        jax.ShapeDtypeStruct((3, num_graphs, hp), jnp.float32),
    )

    z_views, g_views = pl.pallas_call(
        _make_fused_kernel(num_layers),
        out_shape=out_shape,
        grid_spec=pltpu.PrefetchScalarGridSpec(
            num_scalar_prefetch=0,
            grid=(3,),
            in_specs=in_specs,
            out_specs=out_specs,
        ),
        compiler_params=pltpu.CompilerParams(
            dimension_semantics=("parallel",),   # views split across TCs on v7x
        ),
    )(a_hat, pmat, x_views, *flat_params)

    z = z_views[0, :n, :hidden]
    z1 = z_views[1, :n, :hidden]
    z2 = z_views[2, :n, :hidden]
    g = g_views[0, :, :hidden]
    g1 = g_views[1, :, :hidden]
    g2 = g_views[2, :, :hidden]
    return z, g, z1, z2, g1, g2


# ---------------------------------------------------------------------------
if __name__ == "__main__":
    key = jax.random.PRNGKey(0)
    k_x, k_e, k_p, k_aug = jax.random.split(key, 4)

    N = 16          # nodes
    E = 32          # edges
    IN_DIM = 8      # input node features
    HIDDEN = 32     # hidden dim
    G = 2           # graphs in the batch (8 nodes each)

    x = jax.random.normal(k_x, (N, IN_DIM), jnp.float32)
    edge_index = jax.random.randint(k_e, (2, E), 0, N, jnp.int32)
    batch = jnp.repeat(jnp.arange(G, dtype=jnp.int32), N // G)

    params = init_params(k_p, IN_DIM, HIDDEN, num_layers=2)
    augmentor = (aug_identity, make_feature_mask_aug(k_aug, IN_DIM))

    outs = encoder_forward(x, edge_index, batch, params, augmentor, G)
    outs = jax.block_until_ready(outs)

    z, g, z1, z2, g1, g2 = outs
    assert z.shape == (N, HIDDEN) and z1.shape == (N, HIDDEN) and z2.shape == (N, HIDDEN)
    assert g.shape == (G, HIDDEN) and g1.shape == (G, HIDDEN) and g2.shape == (G, HIDDEN)
    assert all(jnp.isfinite(a).all() for a in outs)
    print("KERNEL_OK")
</pallas_src>

<mosaic_0001>
module attributes {stable_mosaic.version = 11 : i64} {
  func.func @kernel(%arg0: i32, %arg1: memref<16x16xbf16, #tpu.memory_space<vmem>>, %arg2: memref<2x16xbf16, #tpu.memory_space<vmem>>, %arg3: memref<1x16x128xbf16, #tpu.memory_space<vmem>>, %arg4: memref<128x128xbf16, #tpu.memory_space<vmem>>, %arg5: memref<1x128xf32, #tpu.memory_space<vmem>>, %arg6: memref<128x128xbf16, #tpu.memory_space<vmem>>, %arg7: memref<1x128xf32, #tpu.memory_space<vmem>>, %arg8: memref<128x128xbf16, #tpu.memory_space<vmem>>, %arg9: memref<1x128xf32, #tpu.memory_space<vmem>>, %arg10: memref<128x128xbf16, #tpu.memory_space<vmem>>, %arg11: memref<1x128xf32, #tpu.memory_space<vmem>>, %arg12: memref<1x16x128xf32, #tpu.memory_space<vmem>>, %arg13: memref<1x2x128xf32, #tpu.memory_space<vmem>>) attributes {dimension_semantics = [#tpu.dimension_semantics<parallel>], iteration_bounds = array<i64: 3>, scalar_prefetch = 0 : i64, scratch_operands = 0 : i64, tpu.core_type = #tpu.core_type<tc>, window_params = [{pipeline_mode = #tpu.pipeline_mode<synchronous>, transform_indices = @transform_0, window_bounds = array<i64: 16, 16>}, {pipeline_mode = #tpu.pipeline_mode<synchronous>, transform_indices = @transform_1, window_bounds = array<i64: 2, 16>}, {transform_indices = @transform_2, window_bounds = array<i64: 1, 16, 128>}, {pipeline_mode = #tpu.pipeline_mode<synchronous>, transform_indices = @transform_3, window_bounds = array<i64: 128, 128>}, {pipeline_mode = #tpu.pipeline_mode<synchronous>, transform_indices = @transform_4, window_bounds = array<i64: 1, 128>}, {pipeline_mode = #tpu.pipeline_mode<synchronous>, transform_indices = @transform_5, window_bounds = array<i64: 128, 128>}, {pipeline_mode = #tpu.pipeline_mode<synchronous>, transform_indices = @transform_6, window_bounds = array<i64: 1, 128>}, {pipeline_mode = #tpu.pipeline_mode<synchronous>, transform_indices = @transform_7, window_bounds = array<i64: 128, 128>}, {pipeline_mode = #tpu.pipeline_mode<synchronous>, transform_indices = @transform_8, window_bounds = array<i64: 1, 128>}, {pipeline_mode = #tpu.pipeline_mode<synchronous>, transform_indices = @transform_9, window_bounds = array<i64: 128, 128>}, {pipeline_mode = #tpu.pipeline_mode<synchronous>, transform_indices = @transform_10, window_bounds = array<i64: 1, 128>}, {transform_indices = @transform_11, window_bounds = array<i64: 1, 16, 128>}, {transform_indices = @transform_12, window_bounds = array<i64: 1, 2, 128>}]} {
    %c0 = arith.constant 0 : index
    %c0_0 = arith.constant 0 : index
    %0 = vector.load %arg1[%c0, %c0_0] : memref<16x16xbf16, #tpu.memory_space<vmem>>, vector<16x16xbf16>
    %c0_1 = arith.constant 0 : index
    %c0_2 = arith.constant 0 : index
    %c0_3 = arith.constant 0 : index
    %1 = vector.load %arg3[%c0_1, %c0_2, %c0_3] : memref<1x16x128xbf16, #tpu.memory_space<vmem>>, vector<1x16x128xbf16>
    %2 = vector.shape_cast %1 : vector<1x16x128xbf16> to vector<16x128xbf16>
    %cst = arith.constant dense<0.000000e+00> : vector<16x128xf32>
    %3 = tpu.matmul %0, %2, %cst {dimension_numbers = #tpu.dot_dimension_numbers<[1], [0], [0], [1], [0, 0, 1, 1], [], []>} : vector<16x16xbf16>, vector<16x128xbf16>, vector<16x128xf32> -> vector<16x128xf32>
    %4 = arith.truncf %3 : vector<16x128xf32> to vector<16x128xbf16>
    %c0_4 = arith.constant 0 : index
    %c0_5 = arith.constant 0 : index
    %5 = vector.load %arg4[%c0_4, %c0_5] : memref<128x128xbf16, #tpu.memory_space<vmem>>, vector<128x128xbf16>
    %cst_6 = arith.constant dense<0.000000e+00> : vector<16x128xf32>
    %6 = tpu.matmul %4, %5, %cst_6 {dimension_numbers = #tpu.dot_dimension_numbers<[1], [0], [0], [1], [0, 0, 1, 1], [], []>} : vector<16x128xbf16>, vector<128x128xbf16>, vector<16x128xf32> -> vector<16x128xf32>
    %c0_7 = arith.constant 0 : index
    %c0_8 = arith.constant 0 : index
    %7 = vector.load %arg5[%c0_7, %c0_8] : memref<1x128xf32, #tpu.memory_space<vmem>>, vector<1x128xf32>
    %8 = vector.broadcast %7 : vector<1x128xf32> to vector<16x128xf32>
    %9 = arith.addf %6, %8 : vector<16x128xf32>
    %cst_9 = arith.constant 0.000000e+00 : f32
    %10 = vector.broadcast %cst_9 : f32 to vector<16x128xf32>
    %11 = arith.maximumf %9, %10 : vector<16x128xf32>
    %12 = arith.truncf %11 : vector<16x128xf32> to vector<16x128xbf16>
    %c0_10 = arith.constant 0 : index
    %c0_11 = arith.constant 0 : index
    %13 = vector.load %arg6[%c0_10, %c0_11] : memref<128x128xbf16, #tpu.memory_space<vmem>>, vector<128x128xbf16>
    %cst_12 = arith.constant dense<0.000000e+00> : vector<16x128xf32>
    %14 = tpu.matmul %12, %13, %cst_12 {dimension_numbers = #tpu.dot_dimension_numbers<[1], [0], [0], [1], [0, 0, 1, 1], [], []>} : vector<16x128xbf16>, vector<128x128xbf16>, vector<16x128xf32> -> vector<16x128xf32>
    %c0_13 = arith.constant 0 : index
    %c0_14 = arith.constant 0 : index
    %15 = vector.load %arg7[%c0_13, %c0_14] : memref<1x128xf32, #tpu.memory_space<vmem>>, vector<1x128xf32>
    %16 = vector.broadcast %15 : vector<1x128xf32> to vector<16x128xf32>
    %17 = arith.addf %14, %16 : vector<16x128xf32>
    %cst_15 = arith.constant 0.000000e+00 : f32
    %18 = vector.broadcast %cst_15 : f32 to vector<16x128xf32>
    %19 = arith.maximumf %17, %18 : vector<16x128xf32>
    %20 = arith.truncf %19 : vector<16x128xf32> to vector<16x128xbf16>
    %cst_16 = arith.constant dense<0.000000e+00> : vector<16x128xf32>
    %21 = tpu.matmul %0, %20, %cst_16 {dimension_numbers = #tpu.dot_dimension_numbers<[1], [0], [0], [1], [0, 0, 1, 1], [], []>} : vector<16x16xbf16>, vector<16x128xbf16>, vector<16x128xf32> -> vector<16x128xf32>
    %22 = arith.truncf %21 : vector<16x128xf32> to vector<16x128xbf16>
    %c0_17 = arith.constant 0 : index
    %c0_18 = arith.constant 0 : index
    %23 = vector.load %arg8[%c0_17, %c0_18] : memref<128x128xbf16, #tpu.memory_space<vmem>>, vector<128x128xbf16>
    %cst_19 = arith.constant dense<0.000000e+00> : vector<16x128xf32>
    %24 = tpu.matmul %22, %23, %cst_19 {dimension_numbers = #tpu.dot_dimension_numbers<[1], [0], [0], [1], [0, 0, 1, 1], [], []>} : vector<16x128xbf16>, vector<128x128xbf16>, vector<16x128xf32> -> vector<16x128xf32>
    %c0_20 = arith.constant 0 : index
    %c0_21 = arith.constant 0 : index
    %25 = vector.load %arg9[%c0_20, %c0_21] : memref<1x128xf32, #tpu.memory_space<vmem>>, vector<1x128xf32>
    %26 = vector.broadcast %25 : vector<1x128xf32> to vector<16x128xf32>
    %27 = arith.addf %24, %26 : vector<16x128xf32>
    %cst_22 = arith.constant 0.000000e+00 : f32
    %28 = vector.broadcast %cst_22 : f32 to vector<16x128xf32>
    %29 = arith.maximumf %27, %28 : vector<16x128xf32>
    %30 = arith.truncf %29 : vector<16x128xf32> to vector<16x128xbf16>
    %c0_23 = arith.constant 0 : index
    %c0_24 = arith.constant 0 : index
    %31 = vector.load %arg10[%c0_23, %c0_24] : memref<128x128xbf16, #tpu.memory_space<vmem>>, vector<128x128xbf16>
    %cst_25 = arith.constant dense<0.000000e+00> : vector<16x128xf32>
    %32 = tpu.matmul %30, %31, %cst_25 {dimension_numbers = #tpu.dot_dimension_numbers<[1], [0], [0], [1], [0, 0, 1, 1], [], []>} : vector<16x128xbf16>, vector<128x128xbf16>, vector<16x128xf32> -> vector<16x128xf32>
    %c0_26 = arith.constant 0 : index
    %c0_27 = arith.constant 0 : index
    %33 = vector.load %arg11[%c0_26, %c0_27] : memref<1x128xf32, #tpu.memory_space<vmem>>, vector<1x128xf32>
    %34 = vector.broadcast %33 : vector<1x128xf32> to vector<16x128xf32>
    %35 = arith.addf %32, %34 : vector<16x128xf32>
    %cst_28 = arith.constant 0.000000e+00 : f32
    %36 = vector.broadcast %cst_28 : f32 to vector<16x128xf32>
    %37 = arith.maximumf %35, %36 : vector<16x128xf32>
    %38 = arith.truncf %37 : vector<16x128xf32> to vector<16x128xbf16>
    %c0_29 = arith.constant 0 : index
    %c0_30 = arith.constant 0 : index
    %c0_31 = arith.constant 0 : index
    %39 = vector.load %arg12[%c0_29, %c0_30, %c0_31] : memref<1x16x128xf32, #tpu.memory_space<vmem>>, vector<1x16x128xf32>
    %40 = vector.shape_cast %39 : vector<1x16x128xf32> to vector<16x128xf32>
    %41 = vector.shape_cast %37 : vector<16x128xf32> to vector<1x16x128xf32>
    tpu.vector_store %arg12[%c0_29, %c0_30, %c0_31], %41 {strides = array<i32>} : memref<1x16x128xf32, #tpu.memory_space<vmem>>, vector<1x16x128xf32>,
    %c0_32 = arith.constant 0 : index
    %c0_33 = arith.constant 0 : index
    %42 = vector.load %arg2[%c0_32, %c0_33] : memref<2x16xbf16, #tpu.memory_space<vmem>>, vector<2x16xbf16>
    %cst_34 = arith.constant dense<0.000000e+00> : vector<2x128xf32>
    %43 = tpu.matmul %42, %38, %cst_34 {dimension_numbers = #tpu.dot_dimension_numbers<[1], [0], [0], [1], [0, 0, 1, 1], [], []>} : vector<2x16xbf16>, vector<16x128xbf16>, vector<2x128xf32> -> vector<2x128xf32>
    %c0_35 = arith.constant 0 : index
    %c0_36 = arith.constant 0 : index
    %c0_37 = arith.constant 0 : index
    %44 = vector.load %arg13[%c0_35, %c0_36, %c0_37] : memref<1x2x128xf32, #tpu.memory_space<vmem>>, vector<1x2x128xf32>
    %45 = vector.shape_cast %44 : vector<1x2x128xf32> to vector<2x128xf32>
    %46 = vector.shape_cast %43 : vector<2x128xf32> to vector<1x2x128xf32>
    tpu.vector_store %arg13[%c0_35, %c0_36, %c0_37], %46 {strides = array<i32>} : memref<1x2x128xf32, #tpu.memory_space<vmem>>, vector<1x2x128xf32>,
    return
  }
  func.func @transform_0(%arg0: i32) -> (i32, i32) {
    %c0_i32 = arith.constant 0 : i32
    %c0_i32_0 = arith.constant 0 : i32
    %c0_i32_1 = arith.constant 0 : i32
    return %c0_i32, %c0_i32_0 : i32, i32
  }
  func.func @transform_1(%arg0: i32) -> (i32, i32) {
    %c0_i32 = arith.constant 0 : i32
    %c0_i32_0 = arith.constant 0 : i32
    %c0_i32_1 = arith.constant 0 : i32
    return %c0_i32, %c0_i32_0 : i32, i32
  }
  func.func @transform_2(%arg0: i32) -> (i32, i32, i32) {
    %c0_i32 = arith.constant 0 : i32
    %c0_i32_0 = arith.constant 0 : i32
    %c0_i32_1 = arith.constant 0 : i32
    return %arg0, %c0_i32, %c0_i32_0 : i32, i32, i32
  }
  func.func @transform_3(%arg0: i32) -> (i32, i32) {
    %c0_i32 = arith.constant 0 : i32
    %c0_i32_0 = arith.constant 0 : i32
    %c0_i32_1 = arith.constant 0 : i32
    return %c0_i32, %c0_i32_0 : i32, i32
  }
  func.func @transform_4(%arg0: i32) -> (i32, i32) {
    %c0_i32 = arith.constant 0 : i32
    %c0_i32_0 = arith.constant 0 : i32
    %c0_i32_1 = arith.constant 0 : i32
    return %c0_i32, %c0_i32_0 : i32, i32
  }
  func.func @transform_5(%arg0: i32) -> (i32, i32) {
    %c0_i32 = arith.constant 0 : i32
    %c0_i32_0 = arith.constant 0 : i32
    %c0_i32_1 = arith.constant 0 : i32
    return %c0_i32, %c0_i32_0 : i32, i32
  }
  func.func @transform_6(%arg0: i32) -> (i32, i32) {
    %c0_i32 = arith.constant 0 : i32
    %c0_i32_0 = arith.constant 0 : i32
    %c0_i32_1 = arith.constant 0 : i32
    return %c0_i32, %c0_i32_0 : i32, i32
  }
  func.func @transform_7(%arg0: i32) -> (i32, i32) {
    %c0_i32 = arith.constant 0 : i32
    %c0_i32_0 = arith.constant 0 : i32
    %c0_i32_1 = arith.constant 0 : i32
    return %c0_i32, %c0_i32_0 : i32, i32
  }
  func.func @transform_8(%arg0: i32) -> (i32, i32) {
    %c0_i32 = arith.constant 0 : i32
    %c0_i32_0 = arith.constant 0 : i32
    %c0_i32_1 = arith.constant 0 : i32
    return %c0_i32, %c0_i32_0 : i32, i32
  }
  func.func @transform_9(%arg0: i32) -> (i32, i32) {
    %c0_i32 = arith.constant 0 : i32
    %c0_i32_0 = arith.constant 0 : i32
    %c0_i32_1 = arith.constant 0 : i32
    return %c0_i32, %c0_i32_0 : i32, i32
  }
  func.func @transform_10(%arg0: i32) -> (i32, i32) {
    %c0_i32 = arith.constant 0 : i32
    %c0_i32_0 = arith.constant 0 : i32
    %c0_i32_1 = arith.constant 0 : i32
    return %c0_i32, %c0_i32_0 : i32, i32
  }
  func.func @transform_11(%arg0: i32) -> (i32, i32, i32) {
    %c0_i32 = arith.constant 0 : i32
    %c0_i32_0 = arith.constant 0 : i32
    %c0_i32_1 = arith.constant 0 : i32
    return %arg0, %c0_i32, %c0_i32_0 : i32, i32, i32
  }
  func.func @transform_12(%arg0: i32) -> (i32, i32, i32) {
    %c0_i32 = arith.constant 0 : i32
    %c0_i32_0 = arith.constant 0 : i32
    %c0_i32_1 = arith.constant 0 : i32
    return %arg0, %c0_i32, %c0_i32_0 : i32, i32, i32
  }
}

</mosaic_0001>

<bundles_post_ra>
// kernel: tpu_custom_call.1
= control target key start
LH: loop header
LB: loop body
LE: loop exit
PB: predicated region body
PF: predicated region fallthrough
CT: control target
= control target key end

     0   :  { %s2357_s0 = inlined_call_operand.hbm [shape: bf16[16,16], index: 0, kind: input, shape index: {}]   ;;  %s2358_s1 = inlined_call_operand.vmem [shape: bf16[2,16], index: 1, kind: input, shape index: {}]   ;;  %s2359_s2 = inlined_call_operand.hbm [shape: bf16[3,16,128], index: 2, kind: input, shape index: {}]   ;;  %s2360_s3 = inlined_call_operand.hbm [shape: bf16[128,128], index: 3, kind: input, shape index: {}]   ;;  %s2361_s4 = inlined_call_operand.vmem [shape: f32[1,128], index: 4, kind: input, shape index: {}]   ;;  %s2362_s5 = inlined_call_operand.hbm [shape: bf16[128,128], index: 5, kind: input, shape index: {}]   ;;  %s2363_s6 = inlined_call_operand.vmem [shape: f32[1,128], index: 6, kind: input, shape index: {}]   ;;  %s2364_s7 = inlined_call_operand.hbm [shape: bf16[128,128], index: 7, kind: input, shape index: {}]   ;;  %s2365_s8 = inlined_call_operand.vmem [shape: f32[1,128], index: 8, kind: input, shape index: {}]   ;;  %s2366_s9 = inlined_call_operand.hbm [shape: bf16[128,128], index: 9, kind: input, shape index: {}]   ;;  %s2367_s10 = inlined_call_operand.vmem [shape: f32[1,128], index: 10, kind: input, shape index: {}]   ;;  %s2368_s11 = inlined_call_operand.hbm [shape: f32[3,16,128], index: 11, kind: output, shape index: {0}]   ;;  %s2369_s12 = inlined_call_operand.hbm [shape: f32[3,2,128], index: 12, kind: output, shape index: {1}]  }
   0x1   :  { %2378 = sst [smem:[#allocation25_spill]] %s2357_s0 }
   0x2   :  { %2379 = sst [smem:[#allocation26_spill]] %s2360_s3 }
   0x3   :  { %2380 = sst [smem:[#allocation27_spill]] %s2362_s5 }
   0x4   :  { %2381 = sst [smem:[#allocation28_spill]] %s2364_s7 }
   0x5   :  { %18 = vsyncpa [#allocation3], 0 }
   0x6   :  { %19 = vsyncpa [#allocation6], 0 }
   0x7   :  { %21 = vsyncpa [#allocation6 + $0x1], 0 }
   0x8   :  { %22 = vsyncpa [#allocation9], 0 }
   0x9   :  { %23 = vsyncpa [#allocation12], 0 }
   0xa   :  { %24 = vsyncpa [#allocation4], 0 }
   0xb   :  { %26 = vsyncpa [#allocation4 + $0x1], 0 }
   0xc   :  { %27 = vsyncpa [#allocation15], 0 }
   0xd   :  { %29 = vsyncpa [#allocation15 + $0x1], 0  ;;  %s2015_s21 = smov 0   ;;  %s2017_s22 = smov 0  }
   0xe   :  { %s2019_s23 = smov 0   ;;  %s2021_s24 = smov 0  }
   0xf LB: > { %2382 = sst [smem:[#allocation23_spill]] %s1922_s21  ;;  %s2036_s25 = sadd.s32 4294967295, %s1934_s24   ;;  %s1934_s24 = sphi %s2021_s24, %s2415_s24   ;;  %s1930_s23 = sphi %s2019_s23, %s2414_s23   ;;  %s1926_s22 = sphi %s2017_s22, %s2413_s22   ;;  %s1922_s21 = sphi %s2015_s21, %s2412_s21  }
  0x10   : > { %s1314_s26 = sadd.s32 4294967294, %s1934_s24   ;;  %p97_p0 = scmp.ne.s32.totalorder %s1926_s22, %s1922_s21 }
  0x11   : > { %p2371_p1 = scmp.eq.s32.totalorder %s2036_s25, 0  ;;  %p295_p3 = scmp.eq.s32.totalorder %s1314_s26, 2 }
  0x12   : > { %p1315_p5 = scmp.ge.s32.totalorder %s1934_s24, 1  ;;  %p328_p7 = scmp.lt.s32.totalorder %s1934_s24, 4 }
  0x13   : > { %p2045_p4 = por %p2371_p1, %p97_p0  ;;  %p2050_p6 = por %p295_p3, %p97_p0 }
  0x14   : > { %p2055_p8 = pnand %p1315_p5, %p328_p7  ;;  %s1936_s30 = smov [#allocation7]  }
  0x15   : > { %s2383_s27 = scalar_select %p2045_p4, 1, 0 }
  0x16   : > { %s2384_s28 = scalar_select %p2050_p6, 1, 0 }
  0x17   : > { %s2386_s29 = scalar_select %p2055_p8, 1, 0 }
  0x18   : > { %2385 = sst [smem:[#allocation24_spill]] %s2384_s28  ;;  %p1550_p9 = pneg %p2055_p8 }
  0x19   : > { %s356_s13 = sshll.u32 %s1936_s30, 4  ;;  %s1937_s15 = smov [#allocation8]   ;;  %s357_s13 = int_to_ptr.vmem [resolvable:$true] %s356_s13 }
  0x1a   : > { %p2063_p10 = pnand %p1550_p9, %p2371_p1  ;;  %s372_s16 = sshll.u32 %s1937_s15, 4  ;;  %s373_s16 = int_to_ptr.vmem [resolvable:$true] %s372_s16 }
  0x1b   : > { %s1938_s17 = smov [#allocation2]   ;;  %s1677_s20 = scalar_lea.vmem %s357_s13, 1024 }
  0x1c   : > { %s340_s18 = sshll.u32 %s1938_s17, 4  ;;  %p2069_p11 = pneg %p2063_p10  ;;  %s341_s18 = int_to_ptr.vmem [resolvable:$true] %s340_s18 }
  0x1d   : > { %p1678_p12 = scmp.ne.s32.totalorder %s357_s13, %s1677_s20  ;;  %p1685_p3 = scmp.lt.s32.totalorder %s357_s13, %s357_s13 }
  0x1e   : > { %p1686_p5 = scmp.lt.s32.totalorder %s1677_s20, %s1677_s20 }
  0x1f   : > { %p1680_p13 = pnand %p1678_p12, %p2069_p11 }
  0x20   : > { %p1687_p7 = por %p1686_p5, %p1685_p3 }
  0x21   : > { %p1681_p0 = pneg %p1680_p13 }
  0x23   : > { %p1688_p9 = pnand %p1687_p7, %p1681_p0 }
  0x25   : > { %1691 = shalt.err (!%p1688_p9)
}
  0x26   : > { %s2373_s26 = smov 64   ;;  %s2374_s30 = smov 4  }
  0x27   : > { %s2389_s3 = sld [smem:[#allocation26_spill]]  ;;  %s1703_s28 = scalar_lea.vmem %s373_s16, 1024 }
  0x28   : > { %p1704_p12 = scmp.ne.s32.totalorder %s373_s16, %s1703_s28  ;;  %p1711_p3 = scmp.lt.s32.totalorder %s373_s16, %s373_s16 }
  0x29   : > { %p1712_p0 = scmp.lt.s32.totalorder %s1703_s28, %s1703_s28 }
  0x2a   : > { %p1706_p13 = pnand %p1704_p12, %p2069_p11 }
  0x2b   : > { %p1713_p5 = por %p1712_p0, %p1711_p3 }
  0x2c   : > { %p1707_p1 = pneg %p1706_p13 }
  0x2d   : > { %1556 = dma.hbm_to_vmem [thread:$0]  (!%p2063_p10), %s2389_s3, 1024, %s357_s13, [#allocation6], %s2373_s26, %s2373_s26, %s2374_s30  }
  0x2e   : > { %p1714_p7 = pnand %p1713_p5, %p1707_p1 }
  0x30   : > { %1717 = shalt.err (!%p1714_p7)
}
  0x31   : > { %s2390_s5 = sld [smem:[#allocation27_spill]]  ;;  %s1729_s13 = scalar_lea.vmem %s341_s18, 128 }
  0x32   : > { %p1730_p9 = scmp.ne.s32.totalorder %s341_s18, %s1729_s13  ;;  %p1737_p2 = scmp.lt.s32.totalorder %s341_s18, %s341_s18 }
  0x33   : > { %p1738_p3 = scmp.lt.s32.totalorder %s1729_s13, %s1729_s13 }
  0x34   : > { %p1732_p12 = pnand %p1730_p9, %p2069_p11 }
  0x35   : > { %p1739_p1 = por %p1738_p3, %p1737_p2 }
  0x36   : > { %p1733_p13 = pneg %p1732_p12 }
  0x37   : > { %1559 = dma.hbm_to_vmem [thread:$0]  (!%p2063_p10), %s2390_s5, 1024, %s373_s16, [#allocation9], %s2373_s26, %s2373_s26, %s2374_s30  }
  0x38   : > { %p1740_p0 = pnand %p1739_p1, %p1733_p13 }
  0x3a   : > { %1743 = shalt.err (!%p1740_p0)
}
  0x3b   : > { %s2391_s0 = sld [smem:[#allocation25_spill]]  ;;  %s1941_s16 = smov [#allocation10]  }
  0x3c   : > { %s388_s15 = sshll.u32 %s1941_s16, 4  ;;  %s1942_s17 = smov [#allocation11]   ;;  %s389_s15 = int_to_ptr.vmem [resolvable:$true] %s388_s15 }
  0x3d   : > { %s404_s20 = sshll.u32 %s1942_s17, 4  ;;  %s1755_s3 = scalar_lea.vmem %s389_s15, 1024  ;;  %s405_s20 = int_to_ptr.vmem [resolvable:$true] %s404_s20 }
  0x3e   : > { %p1756_p5 = scmp.ne.s32.totalorder %s389_s15, %s1755_s3  ;;  %p1763_p9 = scmp.lt.s32.totalorder %s389_s15, %s389_s15 }
  0x3f   : > { %p1764_p12 = scmp.lt.s32.totalorder %s1755_s3, %s1755_s3 }
  0x40   : > { %p1758_p2 = pnand %p1756_p5, %p2069_p11 }
  0x41   : > { %1553 = dma.hbm_to_vmem [thread:$0]  (!%p2063_p10), %s2391_s0, 128, %s341_s18, [#allocation3], %s2373_s26, %s2373_s26, %s2374_s30  }
  0x42   : > { %p1759_p7 = pneg %p1758_p2  ;;  %p1765_p13 = por %p1764_p12, %p1763_p9 }
  0x44   : > { %p1766_p3 = pnand %p1765_p13, %p1759_p7 }
  0x46   : > { %1769 = shalt.err (!%p1766_p3)
}
  0x47   : > { %s2392_s7 = sld [smem:[#allocation28_spill]]  ;;  %s1781_s28 = scalar_lea.vmem %s405_s20, 1024 }
  0x48   : > { %p1782_p1 = scmp.ne.s32.totalorder %s405_s20, %s1781_s28  ;;  %p1789_p2 = scmp.lt.s32.totalorder %s405_s20, %s405_s20 }
  0x49   : > { %p1790_p9 = scmp.lt.s32.totalorder %s1781_s28, %s1781_s28 }
  0x4a   : > { %p1784_p0 = pnand %p1782_p1, %p2069_p11 }
  0x4b   : > { %p1791_p7 = por %p1790_p9, %p1789_p2 }
  0x4c   : > { %p1785_p5 = pneg %p1784_p0 }
  0x4d   : > { %1562 = dma.hbm_to_vmem [thread:$0]  (!%p2063_p10), %s2392_s7, 1024, %s389_s15, [#allocation9], %s2373_s26, %s2373_s26, %s2374_s30  }
  0x4e   : > { %p1792_p12 = pnand %p1791_p7, %p1785_p5 }
  0x50   : > { %1795 = shalt.err (!%p1792_p12)
}
  0x51   : > { %1565 = dma.hbm_to_vmem [thread:$0]  (!%p2063_p10), %s2366_s9, 1024, %s405_s20, [#allocation12], %s2373_s26, %s2373_s26, %s2374_s30  }
  0x52   : > { %s2124_s14 = sadd.s32 1, %s1934_s24   ;;  %s84_s16 = sadd.s32 1, %s1930_s23 }
  0x53   : > { %s81_s19 = ssub.s32 %s1934_s24, %s2124_s14  ;;  %p91_p13 = scmp.ne.s32.totalorder %s1930_s23, %s1926_s22 }
  0x54   : > { %p82_p11 = scmp.eq.s32.totalorder %s81_s19, 0  ;;  %p92_p3 = scmp.eq.s32.totalorder %s1934_s24, 0 }
  0x55   : > { %p1582_p1 = scmp.lt.s32.totalorder %s1934_s24, 3  ;;  %p2393_p5 = scmp.eq.s32.totalorder %s2036_s25, 2 }
  0x56   : > { %s2134_s15 = scalar_select %p82_p11, %s1930_s23, %s84_s16  }
  0x57   : > { %p93_p0 = por %p92_p3, %p91_p13  ;;  %p2138_p2 = por %p2393_p5, %p91_p13 }
  0x58   : > { %s421_s18 = sand.u32 1, %s1934_s24   ;;  %s423_s13 = sand.u32 1, %s1930_s23  }
  0x59   : > { %s2394_s17 = scalar_select %p2138_p2, 1, 0 }
  0x5a   : > { %s1322_s20 = sshll.u32 %s423_s13, 3  ;;  %s1382_s28 = sshll.u32 %s1934_s24, 7 }
  0x5b   : > { %s2148_s26 = scalar_lea.hbm %s2359_s2, %s1382_s28  ;;  %s425_s19 = scalar_lea.vmem [#allocation5], %s1322_s20 }
  0x5c   : > { %s432_s16 = sshll.u32 %s425_s19, 4  ;;  %p2152_p10 = pnand %p1582_p1, %p93_p0  ;;  %s2150_s16 = int_to_ptr.vmem [resolvable:$true] %s432_s16 }
  0x5d   : > { %s2156_s0 = scalar_lea.sflag [#allocation6], %s421_s18  ;;  %s1796_s13 = scalar_lea.hbm %s2148_s26, 128 }
  0x5e   : > { %p1797_p9 = scmp.ne.s32.totalorder %s2148_s26, %s1796_s13  ;;  %p1798_p7 = pneg %p2152_p10 }
  0x5f   : > { %s1801_s20 = scalar_lea.hbm %s2359_s2, 384  ;;  %p1802_p13 = scmp.lt.s32.totalorder %s2148_s26, %s2359_s2 }
  0x60   : > { %p1799_p12 = pnand %p1798_p7, %p1797_p9  ;;  %p1803_p3 = scmp.lt.s32.totalorder %s1801_s20, %s1796_s13 }
  0x62   : > { %p1800_p11 = pneg %p1799_p12  ;;  %p1804_p1 = por %p1803_p3, %p1802_p13 }
  0x64   : > { %p1805_p0 = pnand %p1804_p1, %p1800_p11 }
  0x66   : > { %1808 = shalt.err (!%p1805_p0)
}
  0x67   : > { %s1809_s18 = scalar_lea.vmem %s2150_s16, 128  ;;  %s1943_s5 = smov [#allocation5]  }
  0x68   : > { %p1810_p5 = scmp.ne.s32.totalorder %s2150_s16, %s1809_s18  ;;  %s1814_s7 = sshll.u32 %s1943_s5, 4  ;;  %s1815_s7 = int_to_ptr.vmem [resolvable:$false] %s1814_s7 }
  0x69   : > { %s1816_s28 = scalar_lea.vmem %s1815_s7, 256  ;;  %p1817_p12 = scmp.lt.s32.totalorder %s2150_s16, %s1815_s7 }
  0x6a   : > { %p1812_p6 = pnand %p1810_p5, %p1798_p7  ;;  %p1818_p2 = scmp.lt.s32.totalorder %s1816_s28, %s1809_s18 }
  0x6c   : > { %p1813_p9 = pneg %p1812_p6  ;;  %p1819_p4 = por %p1818_p2, %p1817_p12 }
  0x6e   : > { %p1820_p8 = pnand %p1819_p4, %p1813_p9 }
  0x70   : > { %1823 = shalt.err (!%p1820_p8)
}
  0x71   : > { %s2396_s13 = smov 4   ;;  %s2397_s3 = smov 64  }
  0x72   : > { %1569 = dma.hbm_to_vmem [thread:$0]  (!%p2152_p10), %s2148_s26, 128, %s2150_s16, %s2156_s0, %s2397_s3, %s2397_s3, %s2396_s13  }
  0x73   : > { %p2398_p6 = scmp.ne.s32.totalorder %s2386_s29, 0 }
  0x74   : > { %p2399_p7 = scmp.eq.s32.totalorder (!%p2398_p6), %s2036_s25, 0 }
  0x75   : > { %444 = sbr.rel (%p2398_p6) target bundleno = 1568 (0x620), region = 64 }
  0x7a   : > { %1893 = dma.done.wait (%p2399_p7), [#allocation3], 128   ;;  %p2400_p11 = pmov %p2399_p7 }
  0x7b   : > { %s450_s5 = sand.u32 1, %s2036_s25   ;;  %s2188_s7 = sand.u32 1, %s1926_s22  }
  0x7c   : > { %1895 = vsyncadd (%p2400_p11), [#allocation3], 4294967168  ;;  %s1327_s30 = sshll.u32 %s2188_s7, 3  ;;  %s451_s20 = scalar_lea.sflag [#allocation6], %s450_s5 }
  0x7d   : > { %s454_s21 = scalar_lea.vmem [#allocation5], %s1327_s30  ;;  %p2401_p4 = scmp.ne.s32.totalorder %s2383_s27, 0 }
  0x7f   : > { %1897 = dma.done.wait (%p2401_p4), %s451_s20, 128  }
  0x80   : > { %1899 = vsyncadd (%p2401_p4), %s451_s20, 4294967168  ;;  %p2402_p8 = pmov %p2399_p7 }
  0x81   : > { %p2403_p2 = pmov %p2399_p7 }
  0x82   : > { %1901 = dma.done.wait (%p2402_p8), [#allocation6], 1024  }
  0x83   : > { %1903 = vsyncadd (%p2403_p2), [#allocation6], 4294966272  ;;  %p2404_p10 = pmov %p2403_p2 }
  0x84   : > { %p2405_p13 = pmov %p2403_p2 }
  0x85   : > { %1905 = dma.done.wait (%p2404_p10), [#allocation9], 2048  }
  0x86   : > { %1907 = vsyncadd (%p2405_p13), [#allocation9], 4294965248  ;;  %p2406_p3 = pmov %p2403_p2 }
  0x87   : > { %p2407_p1 = pmov %p2403_p2 }
  0x88   : > { %1909 = dma.done.wait (%p2406_p3), [#allocation12], 1024  }
  0x89   : > { %1911 = vsyncadd (%p2407_p1), [#allocation12], 4294966272  ;;  %v1944_v0 = vmov 0.0   ;;  %vm1945_vm0 = vmmov 0   ;;  %v1632_v1 = vld [vmem:[%s454_s21] sm:$0xff]   ;;  %v2213_v2 = vld [vmem:[#allocation2] sm:$0xff]  }
  0x8a   : > { %1426 = vmatprep.subr.bf16.mxu0 %v1944_v0  ;;  %1428 = vmatprep.mubr.msk.bf16.mxu0 %vm1945_vm0, %v1944_v0  ;;  %vm532_vm1 = vcmask 130048   ;;  %v1634_v3 = vld [vmem:[#allocation7 + $0x38] sm:$0xff]   ;;  %v1635_v4 = vld [vmem:[#allocation7 + $0x30] sm:$0xff]   ;;  %v1636_v5 = vld [vmem:[#allocation7 + $0x28] sm:$0xff]   ;;  %s1332_s13 = sshll.u32 %s2188_s7, 4  ;;  %s1383_s21 = sshll.u32 %s2036_s25, 8 }
  0x8b   : > { %1432 = vmatprep.subr.bf16.mxu1 %v1944_v0  ;;  %1448 = vmatprep.mubr.msk.bf16.mxu1 %vm1945_vm0, %v1944_v0  ;;  %v1637_v6 = vld [vmem:[#allocation7 + $0x20] sm:$0xff]   ;;  %v1638_v7 = vld [vmem:[#allocation7 + $0x18] sm:$0xff]   ;;  %v1639_v8 = vld [vmem:[#allocation7 + $0x10] sm:$0xff]   ;;  %s508_s3 = scalar_lea.vmem [#allocation13], %s1332_s13  ;;  %s2285_s29 = scalar_lea.hbm %s2368_s11, %s1383_s21 }
  0x8c   : > { %1427 = vmatpush3.bf16.msra.mxu0 %v1632_v1  ;;  %1433 = vmatpush3.bf16.msra.mxu1 %v1634_v3  ;;  %v1640_v9 = vld [vmem:[#allocation7 + $0x8] sm:$0xff]   ;;  %v1641_v10 = vld [vmem:[#allocation7] sm:$0xff]   ;;  %v1642_v11 = vld [vmem:[#allocation8 + $0x38] sm:$0xff]   ;;  %s1146_s20 = sshll.u32 %s508_s3, 4  ;;  %s1128_s26 = scalar_lea.sflag [#allocation4], %s2188_s7  ;;  %s2279_s20 = int_to_ptr.vmem [resolvable:$true] %s1146_s20 }
  0x8d   : > { %1452 = vmatprep.subr.bf16.mxu0 %v1944_v0  ;;  %1434 = vmatprep.subr.bf16.mxu1 %v1944_v0  ;;  %v1643_v12 = vld [vmem:[#allocation8 + $0x30] sm:$0xff]   ;;  %v1644_v13 = vld [vmem:[#allocation8 + $0x28] sm:$0xff]   ;;  %v1645_v14 = vld [vmem:[#allocation8 + $0x20] sm:$0xff]   ;;  %s1824_s16 = scalar_lea.vmem %s2279_s20, 256  ;;  %p2408_p5 = scmp.ne.s32.totalorder %s2394_s17, 0 }
  0x8e   : > { %v1646_v15 = vld [vmem:[#allocation8 + $0x18] sm:$0xff]   ;;  %v1647_v21 = vld [vmem:[#allocation8 + $0x10] sm:$0xff]   ;;  %v1648_v22 = vld [vmem:[#allocation8 + $0x8] sm:$0xff]   ;;  %p1825_p0 = scmp.ne.s32.totalorder %s2279_s20, %s1824_s16  ;;  %s1946_s19 = smov [#allocation13]  }
  0x8f   : > { %1429 = vmatmul.mubr.msk.bf16.vlgmr.msra.gmra.mxu0 %vm532_vm1, %v2213_v2  ;;  %v1649_v23 = vld [vmem:[#allocation8] sm:$0xff]   ;;  %v1337_v24 = vld [vmem:[%s2361_s4] ss:$0 sm:$0xff]  ;;  %v1650_v34 = vld [vmem:[#allocation10 + $0x38] sm:$0xff]   ;;  %s1828_s18 = sshll.u32 %s1946_s19, 4  ;;  %s1829_s18 = int_to_ptr.vmem [resolvable:$false] %s1828_s18 }
  0x90   : > { %1468 = vmatprep.mubr.msk.bf16.mxu0 %vm1945_vm0, %v1944_v0  ;;  %1435 = vmatpush3.bf16.msra.mxu1 %v1635_v4  ;;  %v1651_v35 = vld [vmem:[#allocation10 + $0x30] sm:$0xff]   ;;  %v1652_v36 = vld [vmem:[#allocation10 + $0x28] sm:$0xff]   ;;  %v1653_v37 = vld [vmem:[#allocation10 + $0x20] sm:$0xff]   ;;  %p1826_p9 = pnand %p1825_p0, %p2408_p5  ;;  %s1830_s28 = scalar_lea.vmem %s1829_s18, 512 }
  0x91   : > { %1436 = vmatprep.subr.bf16.mxu1 %v1944_v0  ;;  %1453 = vmatpush3.bf16.msra.mxu0 %v1642_v11  ;;  %v1654_v38 = vld [vmem:[#allocation10 + $0x18] sm:$0xff]   ;;  %v1655_v39 = vld [vmem:[#allocation10 + $0x10] sm:$0xff]   ;;  %v1346_v40 = vld [vmem:[%s2363_s6] ss:$0 sm:$0xff]  ;;  %p1831_p6 = scmp.lt.s32.totalorder %s2279_s20, %s1829_s18  ;;  %p1832_p7 = scmp.lt.s32.totalorder %s1830_s28, %s1824_s16 }
  0x92   : > { %1454 = vmatprep.subr.bf16.mxu0 %v1944_v0  ;;  %v1656_v50 = vld [vmem:[#allocation10 + $0x8] sm:$0xff]   ;;  %v1657_v51 = vld [vmem:[#allocation10] sm:$0xff]   ;;  %v1658_v52 = vld [vmem:[#allocation11 + $0x38] sm:$0xff]   ;;  %p1827_p12 = pneg %p1826_p9 }
  0x93   : > { %v1659_v53 = vld [vmem:[#allocation11 + $0x30] sm:$0xff]   ;;  %v1660_v54 = vld [vmem:[#allocation11 + $0x28] sm:$0xff]   ;;  %v1661_v55 = vld [vmem:[#allocation11 + $0x20] sm:$0xff]   ;;  %p1833_p11 = por %p1832_p7, %p1831_p6 }
  0x94   : > { %1437 = vmatpush3.bf16.msra.mxu1 %v1636_v5  ;;  %v1662_v56 = vld [vmem:[#allocation11 + $0x18] sm:$0xff]   ;;  %v1663_v62 = vld [vmem:[#allocation11 + $0x10] sm:$0xff]   ;;  %v1664_v63 = vld [vmem:[#allocation11 + $0x8] sm:$0xff]  }
  0x95   : > { %1438 = vmatprep.subr.bf16.mxu1 %v1944_v0  ;;  %1455 = vmatpush3.bf16.msra.mxu0 %v1643_v12  ;;  %v1665_v1 = vld [vmem:[#allocation11] sm:$0xff]   ;;  %p1834_p4 = pnand %p1833_p11, %p1827_p12 }
  0x96   : > { %1456 = vmatprep.subr.bf16.mxu0 %v1944_v0 }
  0x98   : > { %1439 = vmatpush3.bf16.msra.mxu1 %v1637_v6 }
  0x99   : > { %1440 = vmatprep.subr.bf16.mxu1 %v1944_v0  ;;  %1457 = vmatpush3.bf16.msra.mxu0 %v1644_v13 }
  0x9a   : > { %1458 = vmatprep.subr.bf16.mxu0 %v1944_v0 }
  0x9c   : > { %1441 = vmatpush3.bf16.msra.mxu1 %v1638_v7 }
  0x9d   : > { %1442 = vmatprep.subr.bf16.mxu1 %v1944_v0  ;;  %1459 = vmatpush3.bf16.msra.mxu0 %v1645_v14 }
  0x9e   : > { %1460 = vmatprep.subr.bf16.mxu0 %v1944_v0 }
  0xa0   : > { %1443 = vmatpush3.bf16.msra.mxu1 %v1639_v8 }
  0xa1   : > { %1444 = vmatprep.subr.bf16.mxu1 %v1944_v0  ;;  %1461 = vmatpush3.bf16.msra.mxu0 %v1646_v15 }
  0xa2   : > { %1462 = vmatprep.subr.bf16.mxu0 %v1944_v0 }
  0xa4   : > { %1445 = vmatpush3.bf16.msra.mxu1 %v1640_v9 }
  0xa5   : > { %1446 = vmatprep.subr.bf16.mxu1 %v1944_v0  ;;  %1463 = vmatpush3.bf16.msra.mxu0 %v1647_v21  ;;  %v1082_v21 = vld [vmem:[%s2358_s1] sm:$0x1] }
  0xa6   : > { %1464 = vmatprep.subr.bf16.mxu0 %v1944_v0 }
  0xa8   : > { %1447 = vmatpush3.bf16.msra.mxu1 %v1641_v10 }
  0xa9   : > { %1472 = vmatprep.subr.bf16.mxu1 %v1944_v0  ;;  %1465 = vmatpush3.bf16.msra.mxu0 %v1648_v22 }
  0xaa   : > { %1466 = vmatprep.subr.bf16.mxu0 %v1944_v0 }
  0xad   : > { %1467 = vmatpush3.bf16.msra.mxu0 %v1649_v23 }
  0xae   : > { %1478 = vmatprep.subr.bf16.mxu0 %v1944_v0 }
 0x14f   : > { %v570_v16 = vpop.f32.mrf.mxu0 }
 0x151   : > { %v1430_v17 = vpop.f32.mrf.mxu0 }
 0x153   : > { %v573_v18 = vpop.f32.mrf.mxu0 }
 0x154   : > { %v577_v19 = vpack.c.bf16 %v573_v18, %v570_v16 }
 0x155   : > { %v1431_v20 = vpop.f32.mrf.mxu0 }
 0x156   : > { %1449 = vmatmul.mubr.bf16.vlgmr.msra.gmra.mxu1 %v577_v19 }
 0x157   : > { %1474 = vmatprep.mubr.msk.bf16.mxu1 %vm1945_vm0, %v1944_v0 }
 0x216   : > { %v683_v25 = vpop.f32.mrf.mxu1 }
 0x217   : > { %v684_v27 = vadd.f32 %v1337_v24, %v683_v25 }
 0x218   : > { %v1450_v26 = vpop.f32.mrf.mxu1 }
 0x219   : > { %v690_v31 = vmax.f32 %v684_v27, 0.0 }
 0x21a   : > { %v686_v28 = vpop.f32.mrf.mxu1 }
 0x21b   : > { %v687_v29 = vadd.f32 %v1337_v24, %v686_v28 }
 0x21c   : > { %v1451_v30 = vpop.f32.mrf.mxu1 }
 0x21d   : > { %v691_v32 = vmax.f32 %v687_v29, 0.0 }
 0x21f   : > { %v692_v33 = vpack.c.bf16 %v691_v32, %v690_v31 }
 0x221   : > { %1469 = vmatmul.mubr.bf16.vlgmr.msra.gmra.mxu0 %v692_v33 }
 0x222   : > { %1494 = vmatprep.mubr.msk.bf16.mxu0 %vm1945_vm0, %v1944_v0  ;;  %1479 = vmatpush3.bf16.msra.mxu0 %v1650_v34 }
 0x223   : > { %1480 = vmatprep.subr.bf16.mxu0 %v1944_v0 }
 0x226   : > { %1481 = vmatpush3.bf16.msra.mxu0 %v1651_v35 }
 0x227   : > { %1482 = vmatprep.subr.bf16.mxu0 %v1944_v0 }
 0x22a   : > { %1483 = vmatpush3.bf16.msra.mxu0 %v1652_v36 }
 0x22b   : > { %1484 = vmatprep.subr.bf16.mxu0 %v1944_v0 }
 0x22e   : > { %1485 = vmatpush3.bf16.msra.mxu0 %v1653_v37 }
 0x22f   : > { %1486 = vmatprep.subr.bf16.mxu0 %v1944_v0 }
 0x232   : > { %1487 = vmatpush3.bf16.msra.mxu0 %v1654_v38 }
 0x233   : > { %1488 = vmatprep.subr.bf16.mxu0 %v1944_v0 }
 0x236   : > { %1489 = vmatpush3.bf16.msra.mxu0 %v1655_v39 }
 0x237   : > { %1490 = vmatprep.subr.bf16.mxu0 %v1944_v0 }
 0x23a   : > { %1491 = vmatpush3.bf16.msra.mxu0 %v1656_v50 }
 0x23b   : > { %1492 = vmatprep.subr.bf16.mxu0 %v1944_v0 }
 0x23e   : > { %1493 = vmatpush3.bf16.msra.mxu0 %v1657_v51 }
 0x23f   : > { %1518 = vmatprep.subr.bf16.mxu0 %v1944_v0 }
 0x2e1   : > { %v798_v41 = vpop.f32.mrf.mxu0 }
 0x2e2   : > { %v799_v43 = vadd.f32 %v1346_v40, %v798_v41 }
 0x2e3   : > { %v1470_v42 = vpop.f32.mrf.mxu0 }
 0x2e4   : > { %v805_v47 = vmax.f32 %v799_v43, 0.0 }
 0x2e5   : > { %v801_v44 = vpop.f32.mrf.mxu0 }
 0x2e6   : > { %v802_v45 = vadd.f32 %v1346_v40, %v801_v44 }
 0x2e7   : > { %v1471_v46 = vpop.f32.mrf.mxu0 }
 0x2e8   : > { %v806_v48 = vmax.f32 %v802_v45, 0.0 }
 0x2ea   : > { %v807_v49 = vpack.c.bf16 %v806_v48, %v805_v47 }
 0x2ec   : > { %1473 = vmatpush3.bf16.msra.mxu1 %v807_v49 }
 0x2ed   : > { %1498 = vmatprep.subr.bf16.mxu1 %v1944_v0 }
 0x2ef   : > { %1475 = vmatmul.mubr.msk.bf16.vlgmr.msra.gmra.mxu1 %vm532_vm1, %v2213_v2  ;;  %v1356_v2 = vld [vmem:[%s2365_s8] ss:$0 sm:$0xff] }
 0x2f0   : > { %1514 = vmatprep.mubr.msk.bf16.mxu1 %vm1945_vm0, %v1944_v0  ;;  %1499 = vmatpush3.bf16.msra.mxu1 %v1658_v52 }
 0x2f1   : > { %1500 = vmatprep.subr.bf16.mxu1 %v1944_v0 }
 0x2f4   : > { %1501 = vmatpush3.bf16.msra.mxu1 %v1659_v53 }
 0x2f5   : > { %1502 = vmatprep.subr.bf16.mxu1 %v1944_v0 }
 0x2f8   : > { %1503 = vmatpush3.bf16.msra.mxu1 %v1660_v54 }
 0x2f9   : > { %1504 = vmatprep.subr.bf16.mxu1 %v1944_v0 }
 0x2fc   : > { %1505 = vmatpush3.bf16.msra.mxu1 %v1661_v55 }
 0x2fd   : > { %1506 = vmatprep.subr.bf16.mxu1 %v1944_v0 }
 0x300   : > { %1507 = vmatpush3.bf16.msra.mxu1 %v1662_v56 }
 0x301   : > { %1508 = vmatprep.subr.bf16.mxu1 %v1944_v0 }
 0x304   : > { %1509 = vmatpush3.bf16.msra.mxu1 %v1663_v62 }
 0x305   : > { %1510 = vmatprep.subr.bf16.mxu1 %v1944_v0 }
 0x308   : > { %1511 = vmatpush3.bf16.msra.mxu1 %v1664_v63 }
 0x309   : > { %1512 = vmatprep.subr.bf16.mxu1 %v1944_v0 }
 0x30c   : > { %1513 = vmatpush3.bf16.msra.mxu1 %v1665_v1 }
 0x3af   : > { %v842_v57 = vpop.f32.mrf.mxu1 }
 0x3b1   : > { %v1476_v58 = vpop.f32.mrf.mxu1 }
 0x3b3   : > { %v845_v59 = vpop.f32.mrf.mxu1 }
 0x3b4   : > { %v849_v60 = vpack.c.bf16 %v845_v59, %v842_v57 }
 0x3b5   : > { %v1477_v61 = vpop.f32.mrf.mxu1 }
 0x3b6   : > { %1495 = vmatmul.mubr.bf16.vlgmr.msra.gmra.mxu0 %v849_v60 }
 0x3b7   : > { %1520 = vmatprep.mubr.msk.bf16.mxu0 %vm1945_vm0, %v1944_v0  ;;  %v1365_v0 = vld [vmem:[%s2367_s10] ss:$0 sm:$0xff] }
 0x476   : > { %v955_v3 = vpop.f32.mrf.mxu0 }
 0x477   : > { %v956_v5 = vadd.f32 %v1356_v2, %v955_v3 }
 0x478   : > { %v1496_v4 = vpop.f32.mrf.mxu0 }
 0x479   : > { %v962_v9 = vmax.f32 %v956_v5, 0.0 }
 0x47a   : > { %v958_v6 = vpop.f32.mrf.mxu0 }
 0x47b   : > { %v959_v7 = vadd.f32 %v1356_v2, %v958_v6 }
 0x47c   : > { %v1497_v8 = vpop.f32.mrf.mxu0 }
 0x47d   : > { %v963_v10 = vmax.f32 %v959_v7, 0.0 }
 0x47f   : > { %v964_v11 = vpack.c.bf16 %v963_v10, %v962_v9 }
 0x481   : > { %1515 = vmatmul.mubr.bf16.vlgmr.msra.gmra.mxu1 %v964_v11 }
 0x541   : > { %v1070_v12 = vpop.f32.mrf.mxu1 }
 0x542   : > { %v1071_v13 = vadd.f32 %v1365_v0, %v1070_v12 }
 0x543   : > { %v1516_v14 = vpop.f32.mrf.mxu1 }
 0x544   : > { %v1077_v15 = vmax.f32 %v1071_v13, 0.0 }
 0x545   : > { %v1073_v16 = vpop.f32.mrf.mxu1 }
 0x546   : > { %1080 = vst [vmem:[%s508_s3] sm:$0xff] %v1077_v15  ;;  %v1074_v17 = vadd.f32 %v1365_v0, %v1073_v16 }
 0x547   : > { %v1517_v18 = vpop.f32.mrf.mxu1 }
 0x548   : > { %v1078_v19 = vmax.f32 %v1074_v17, 0.0 }
 0x54a   : > { %v1079_v20 = vpack.c.bf16 %v1078_v19, %v1077_v15  ;;  %1081 = vst [vmem:[%s508_s3 + $0x8] sm:$0xff] %v1078_v19 }
 0x54c   : > { %1519 = vmatpush3.bf16.msra.mxu0 %v1079_v20 }
 0x54f   : > { %1521 = vmatmul.mubr.msk.bf16.vlgmr.msra.gmra.mxu0 %vm532_vm1, %v1082_v21 }
 0x550   : > { %1837 = shalt.err (!%p1834_p4)
}
 0x551   : > { %s1838_s13 = scalar_lea.hbm %s2285_s29, 256  ;;  %s1842_s30 = scalar_lea.hbm %s2368_s11, 768 }
 0x552   : > { %p1839_p8 = scmp.ne.s32.totalorder %s2285_s29, %s1838_s13  ;;  %p1843_p13 = scmp.lt.s32.totalorder %s2285_s29, %s2368_s11 }
 0x553   : > { %p1844_p3 = scmp.lt.s32.totalorder %s1842_s30, %s1838_s13 }
 0x554   : > { %p1840_p2 = pnand %p1839_p8, %p2408_p5 }
 0x555   : > { %p1845_p1 = por %p1844_p3, %p1843_p13 }
 0x556   : > { %p1841_p10 = pneg %p1840_p2 }
 0x558   : > { %p1846_p0 = pnand %p1845_p1, %p1841_p10 }
 0x55a   : > { %1849 = shalt.err (!%p1846_p0)
}
 0x55b   : > { %s1947_s27 = smov 128   ;;  %s1948_s16 = smov 8  }
 0x55c   : > { %1546 = dma.vmem_to_hbm [thread:$0]  (%p2408_p5), %s2279_s20, 256, %s2285_s29, %s1128_s26, %s1947_s27, %s1947_s27, %s1948_s16  }
 0x55d   : > { %s1333_s19 = sshll.u32 %s2188_s7, 1  ;;  %s1379_s13 = sshll.u32 %s2036_s25, 5 }
 0x55e   : > { %s515_s18 = scalar_lea.vmem [#allocation14], %s1333_s19  ;;  %s2317_s30 = scalar_lea.hbm %s2369_s12, %s1379_s13 }
 0x55f   : > { %s1162_s28 = sshll.u32 %s515_s18, 4  ;;  %s1133_s21 = scalar_lea.sflag [#allocation15], %s2188_s7  ;;  %s2312_s28 = int_to_ptr.vmem [resolvable:$true] %s1162_s28 }
 0x560   : > { %s1850_s0 = scalar_lea.vmem %s2312_s28, 32  ;;  %s1949_s25 = smov [#allocation14]  }
 0x561   : > { %p1851_p9 = scmp.ne.s32.totalorder %s2312_s28, %s1850_s0  ;;  %s1854_s20 = sshll.u32 %s1949_s25, 4  ;;  %s1855_s20 = int_to_ptr.vmem [resolvable:$false] %s1854_s20 }
 0x562   : > { %s1856_s29 = scalar_lea.vmem %s1855_s20, 64  ;;  %p1857_p7 = scmp.lt.s32.totalorder %s2312_s28, %s1855_s20 }
 0x563   : > { %p1852_p12 = pnand %p1851_p9, %p2408_p5  ;;  %p1858_p11 = scmp.lt.s32.totalorder %s1856_s29, %s1850_s0 }
 0x565   : > { %p1853_p6 = pneg %p1852_p12  ;;  %p1859_p4 = por %p1858_p11, %p1857_p7 }
 0x567   : > { %p1860_p8 = pnand %p1859_p4, %p1853_p6 }
 0x60f   : > { %v1120_v22 = vpop.f32.mrf.mxu0 }
 0x610   : > { %1126 = vst [vmem:[%s515_s18] sm:$0x3] %v1120_v22 }
 0x611   : > { %v1522_v23 = vpop.f32.mrf.mxu0 }
 0x612   : > { %1863 = shalt.err (!%p1860_p8)
}
 0x613   : > { %s1864_s26 = scalar_lea.hbm %s2317_s30, 32  ;;  %s1868_s16 = scalar_lea.hbm %s2369_s12, 96 }
 0x614   : > { %p1865_p2 = scmp.ne.s32.totalorder %s2317_s30, %s1864_s26  ;;  %p1869_p3 = scmp.lt.s32.totalorder %s2317_s30, %s2369_s12 }
 0x615   : > { %p1870_p1 = scmp.lt.s32.totalorder %s1868_s16, %s1864_s26 }
 0x616   : > { %p1866_p10 = pnand %p1865_p2, %p2408_p5 }
 0x617   : > { %p1871_p0 = por %p1870_p1, %p1869_p3 }
 0x618   : > { %p1867_p13 = pneg %p1866_p10 }
 0x61a   : > { %p1872_p9 = pnand %p1871_p0, %p1867_p13 }
 0x61c   : > { %1875 = shalt.err (!%p1872_p9)
}
 0x61d   : > { %1547 = dma.vmem_to_hbm [thread:$0]  (%p2408_p5), %s2312_s28, 32, %s2317_s30, %s1133_s21   ;;  %v1123_v24 = vpop.f32.mrf.mxu0 }
 0x61f   : > { %v1523_v25 = vpop.f32.mrf.mxu0 }
 0x620 PF: > { %s2409_s13 = sld [smem:[#allocation23_spill]]  ;;  %p1588_p12 = scmp.ge.s32.totalorder %s1934_s24, 2 }
 0x621   : > { %s2410_s3 = sld [smem:[#allocation24_spill]] }
 0x626   : > { %s1174_s5 = sand.u32 1, %s2409_s13  }
 0x627   : > { %p2411_p6 = scmp.ne.s32.totalorder %s2410_s3, 0  ;;  %s1175_s0 = scalar_lea.sflag [#allocation4], %s1174_s5 }
 0x629   : > { %p1571_p7 = pnand %p1588_p12, %p2411_p6 }
 0x62b   : > { %p1572_p11 = pneg %p1571_p7 }
 0x62d   : > { %1913 = dma.done.wait (%p1572_p11), %s1175_s0, 256  }
 0x62e   : > { %1915 = vsyncadd (%p1572_p11), %s1175_s0, 4294967040  ;;  %s1184_s25 = scalar_lea.sflag [#allocation15], %s1174_s5 }
 0x62f   : > { %1917 = dma.done.wait (%p1572_p11), %s1184_s25, 32  }
 0x630   : > { %1919 = vsyncadd (%p1572_p11), %s1184_s25, 4294967264  ;;  %p32_p5 = scmp.ge.s32.totalorder %s2124_s14, 5   ;;  %s2412_s21 = smov %s1926_s22 }
 0x631   : > { %s2413_s22 = smov %s1930_s23  ;;  %s2414_s23 = smov %s2134_s15 }
 0x632   : > { %s2415_s24 = smov %s2124_s14  ;;  %34 = sbr.rel (!%p32_p5) target bundleno = 15 (0xf), region = 147 }
 0x637   :  { %1189 = vsyncpa [#allocation3], 1 }
 0x638   :  { %1191 = vsyncpa [#allocation3 + $0x1], 1 }
 0x639   :  { %1192 = vsyncpa [#allocation6], 1 }
 0x63a   :  { %1194 = vsyncpa [#allocation6 + $0x1], 1 }
 0x63b   :  { %1195 = vsyncpa [#allocation9], 1 }
 0x63c   :  { %1196 = vsyncpa [#allocation12], 1 }
 0x63d   :  { %1197 = vsyncpa [#allocation4], 1 }
 0x63e   :  { %1199 = vsyncpa [#allocation4 + $0x1], 1 }
 0x63f   :  { %1200 = vsyncpa [#allocation15], 1 }
 0x640   :  { %1202 = vsyncpa [#allocation15 + $0x1], 1 }

</bundles_post_ra>
